<compile_context>
chip_gen: v7x
topology: tpu7x:2x2x1
jax: 0.10.0
libtpu: 0.0.40
codegen_flags: <defaults>
</compile_context>

<pallas_src>
import functools
import math

import numpy as np
import jax
import jax.numpy as jnp
from jax.experimental import pallas as pl
from jax.experimental.pallas import tpu as pltpu

_LANE = 128          # vreg lane width / MXU-native tile (feature-dim padding)
_SUBLANE = 8         # f32 sublane count (batch padding granule)
_MAX_BATCH_TILE = 512
_MIB = 1 << 20
# Resident weight stacks above this are streamed from HBM layer-by-layer
# (v7x has only 64 MiB of VMEM per TensorCore).
_DEFAULT_RESIDENT_WEIGHT_BUDGET = 40 * _MIB


def _cdiv(a, b):
    return -(-a // b)


def _round_up(v, m):
    return _cdiv(v, m) * m


def _pick_batch_tiling(batch):
    """Batch tile that (a) minimizes batch padding and (b) yields >= 2 grid steps
    whenever batch >= 16, so the 'parallel' grid axis can shard across the two
    v7x TensorCores."""
    n_tiles = _cdiv(batch, _MAX_BATCH_TILE)
    if batch >= 2 * _SUBLANE:
        n_tiles = max(n_tiles, 2)
    tile_b = _round_up(_cdiv(batch, n_tiles), _SUBLANE)
    batch_p = _round_up(batch, tile_b)
    return tile_b, batch_p


# ---------------------------------------------------------------------------
# Kernel bodies
# ---------------------------------------------------------------------------

def _resident_mlp_kernel(*refs, n_linear, compute_dtype):
    """All weights VMEM-resident.  refs = x, (w_i, b_i)*n_linear, o, act_a, act_b."""
    x_ref = refs[0]
    wb = refs[1:1 + 2 * n_linear]
    o_ref = refs[1 + 2 * n_linear]
    acts = refs[2 + 2 * n_linear:4 + 2 * n_linear]   # ping-pong activation scratch

    def dense(inp, w_ref, b_ref):
        h = jnp.dot(inp.astype(compute_dtype), w_ref[...],
                    preferred_element_type=jnp.float32)
        return h + b_ref[...]                         # bias add in f32

    # Layer 0: dim_in_p -> n_node_p, tanh.
    acts[0][...] = jnp.tanh(dense(x_ref[...], wb[0], wb[1]))

    # Hidden layers (static unroll), alternating scratch buffers each layer.
    for li in range(1, n_linear - 1):
        src, dst = acts[(li - 1) % 2], acts[li % 2]
        dst[...] = jnp.tanh(dense(src[...], wb[2 * li], wb[2 * li + 1]))

    # Output layer: no activation, lane-dense store.
    y = dense(acts[(n_linear - 2) % 2][...], wb[-2], wb[-1])
    o_ref[...] = y.astype(o_ref.dtype)


def _streamed_mlp_kernel(*refs, n_layer, compute_dtype):
    """Hidden-layer weights streamed from HBM with a 2-deep double buffer.

    refs = x, w_first, w_last, b_0..b_{n_linear-1}, w_hidden_stack(HBM),
           o, act_a, act_b, w_buf(2, n_node_p, n_node_p), dma_sem(2,)
    """
    n_linear = n_layer + 2
    x_ref = refs[0]
    w_first = refs[1]
    w_last = refs[2]
    b_refs = refs[3:3 + n_linear]
    w_hstack = refs[3 + n_linear]            # HBM: (n_layer, n_node_p, n_node_p)
    o_ref = refs[4 + n_linear]
    act_a, act_b, w_buf, sem = refs[5 + n_linear:]
    acts = (act_a, act_b)

    def hidden_copy(hl, slot):
        return pltpu.make_async_copy(w_hstack.at[hl], w_buf.at[slot], sem.at[slot])

    # Prime the first hidden weight while layer 0 runs on the MXU.
    hidden_copy(0, 0).start()

    # Layer 0 (resident weight).
    h = jnp.dot(x_ref[...].astype(compute_dtype), w_first[...],
                preferred_element_type=jnp.float32)
    acts[0][...] = jnp.tanh(h + b_refs[0][...])

    # Hidden layers: wait for this layer's weight, prefetch the next, compute.
    for hl in range(n_layer):
        slot = hl & 1
        hidden_copy(hl, slot).wait()
        if hl + 1 < n_layer:
            hidden_copy(hl + 1, 1 - slot).start()
        src, dst = acts[hl % 2], acts[(hl + 1) % 2]
        h = jnp.dot(src[...].astype(compute_dtype), w_buf[slot],
                    preferred_element_type=jnp.float32)
        dst[...] = jnp.tanh(h + b_refs[hl + 1][...])

    # Output layer (resident weight), no activation.
    y = jnp.dot(acts[n_layer % 2][...].astype(compute_dtype), w_last[...],
                preferred_element_type=jnp.float32)
    o_ref[...] = (y + b_refs[n_linear - 1][...]).astype(o_ref.dtype)


# ---------------------------------------------------------------------------
# Wrapper
# ---------------------------------------------------------------------------

def dnn_forward(params, x, *, compute_dtype=jnp.float32,
                resident_weight_budget_bytes=_DEFAULT_RESIDENT_WEIGHT_BUDGET):
    """Fused MLP forward: one pallas_call for the whole stack of layers.

    compute_dtype: dtype of the matmul operands (weights + activation casts);
    accumulation / bias / tanh are always f32.  Use jnp.bfloat16 on v6e/v7x for
    realistic n_node (MXU is natively bf16, and weight VMEM/HBM bytes are halved).
    """
    batch, dim_in = x.shape
    n_linear = len(params)
    assert n_linear >= 2
    n_layer = n_linear - 2
    n_node = params[0][0].shape[1]
    dim_out = params[-1][0].shape[1]

    compute_dtype = np.dtype(compute_dtype)
    cd_size = compute_dtype.itemsize

    tile_b, batch_p = _pick_batch_tiling(batch)
    num_tiles = batch_p // tile_b
    dim_in_p = _round_up(dim_in, _LANE)
    n_node_p = _round_up(n_node, _LANE)
    dim_out_p = _round_up(dim_out, _LANE)

    x_p = jnp.zeros((batch_p, dim_in_p), x.dtype).at[:batch, :dim_in].set(x)

    # Zero-pad each layer to MXU-friendly shapes (exact: tanh(0)=0, zero bias/rows/cols).
    layer_dims = ([(dim_in_p, n_node_p)] + [(n_node_p, n_node_p)] * n_layer
                  + [(n_node_p, dim_out_p)])
    padded_w, padded_b = [], []
    for (w, b), (in_p, out_p) in zip(params, layer_dims):
        n_in, n_out = w.shape
        w_p = jnp.zeros((in_p, out_p), compute_dtype).at[:n_in, :n_out].set(
            w.astype(compute_dtype))
        b_p = jnp.zeros((1, out_p), jnp.float32).at[0, :n_out].set(
            b.astype(jnp.float32))
        padded_w.append(w_p)
        padded_b.append(b_p)

    weight_bytes = sum(w.size for w in padded_w) * cd_size
    bias_bytes = sum(b.size for b in padded_b) * 4
    use_streaming = (n_layer > 0) and (weight_bytes > resident_weight_budget_bytes)

    grid = (num_tiles,)
    x_spec = pl.BlockSpec((tile_b, dim_in_p), lambda i: (i, 0))
    out_spec = pl.BlockSpec((tile_b, dim_out_p), lambda i: (i, 0))
    out_shape = jax.ShapeDtypeStruct((batch_p, dim_out_p), x.dtype)

    def resident_spec(arr):
        # Constant block index: double-buffering buys nothing, Buffered(1) halves
        # the VMEM held by the resident weight/bias stack.
        return pl.BlockSpec(arr.shape, lambda i: (0, 0),
                            pipeline_mode=pl.Buffered(1))

    act_bytes = 2 * tile_b * n_node_p * 4                       # ping-pong scratch (f32)
    io_bytes = 2 * tile_b * (dim_in_p + dim_out_p) * x.dtype.itemsize  # double-buffered x/out

    if not use_streaming:
        operands = [x_p]
        in_specs = [x_spec]
        for w_p, b_p in zip(padded_w, padded_b):
            operands += [w_p, b_p]
            in_specs += [resident_spec(w_p), resident_spec(b_p)]
        scratch = [pltpu.VMEM((tile_b, n_node_p), jnp.float32)] * 2
        vmem_bytes = weight_bytes + bias_bytes + io_bytes + act_bytes
        hbm_weight_bytes = weight_bytes + bias_bytes
        kernel = functools.partial(_resident_mlp_kernel,
                                   n_linear=n_linear, compute_dtype=compute_dtype)
    else:
        # Hidden weights (all (n_node_p, n_node_p)) stay in HBM and are streamed
        # per layer; first/last weights and all biases are small -> resident.
        w_hstack = jnp.stack(padded_w[1:1 + n_layer])
        operands = [x_p, padded_w[0], padded_w[-1], *padded_b, w_hstack]
        in_specs = ([x_spec, resident_spec(padded_w[0]), resident_spec(padded_w[-1])]
                    + [resident_spec(b_p) for b_p in padded_b]
                    + [pl.BlockSpec(memory_space=pl.ANY)])
        scratch = ([pltpu.VMEM((tile_b, n_node_p), jnp.float32)] * 2
                   + [pltpu.VMEM((2, n_node_p, n_node_p), compute_dtype),
                      pltpu.SemaphoreType.DMA((2,))])
        resident_small = (padded_w[0].size + padded_w[-1].size) * cd_size + bias_bytes
        vmem_bytes = (resident_small + io_bytes + act_bytes
                      + 2 * n_node_p * n_node_p * cd_size)
        # Hidden weights are re-streamed from HBM once per batch tile.
        hbm_weight_bytes = (resident_small
                            + num_tiles * n_layer * n_node_p * n_node_p * cd_size)
        kernel = functools.partial(_streamed_mlp_kernel,
                                   n_layer=n_layer, compute_dtype=compute_dtype)

    # Real footprint + headroom instead of the 16/32 MiB default scoped limit.
    vmem_limit = min(max(32 * _MIB, int(vmem_bytes * 1.25) + 2 * _MIB), 128 * _MIB)

    flops = 2 * batch_p * sum(ip * op for ip, op in layer_dims)
    transcendentals = batch_p * n_node_p * (n_linear - 1)
    bytes_accessed = (batch_p * (dim_in_p + dim_out_p) * x.dtype.itemsize
                      + hbm_weight_bytes)

    out_p = pl.pallas_call(
        kernel,
        out_shape=out_shape,
        grid=grid,
        in_specs=in_specs,
        out_specs=out_spec,
        scratch_shapes=scratch,
        compiler_params=pltpu.CompilerParams(
            dimension_semantics=("parallel",),   # megacore-shard batch tiles on v7x
            vmem_limit_bytes=vmem_limit),
        cost_estimate=pl.CostEstimate(
            flops=flops,
            transcendentals=transcendentals,
            bytes_accessed=bytes_accessed),
    )(*operands)

    return out_p[:batch, :dim_out]


# ---------------------------------------------------------------------------
# Parameter init (matches the PyTorch module) and plain-JAX reference
# ---------------------------------------------------------------------------

def xavier_uniform(key, n_in, n_out, dtype=jnp.float32):
    # Matches torch.nn.init.xavier_uniform_ (gain=1) on a (n_out, n_in) weight;
    # generated directly in (n_in, n_out) layout (same uniform bound).
    bound = math.sqrt(6.0 / (n_in + n_out))
    return jax.random.uniform(key, (n_in, n_out), dtype, minval=-bound, maxval=bound)


def init_dnn_params(key, dim_in, dim_out, n_layer, n_node):
    """Same stack of layers as the PyTorch DNN.__init__ (zero bias init)."""
    dims = [(dim_in, n_node)] + [(n_node, n_node)] * n_layer + [(n_node, dim_out)]
    params = []
    for (ni, no) in dims:
        key, sub = jax.random.split(key)
        w = xavier_uniform(sub, ni, no)
        b = jnp.zeros((no,), jnp.float32)
        params.append((w, b))
    return params


def dnn_forward_ref(params, x):
    """Plain-JAX reference for correctness check."""
    out = x
    n = len(params)
    for i, (w, b) in enumerate(params):
        out = out @ w + b
        if i < n - 1:
            out = jnp.tanh(out)
    return out


if __name__ == "__main__":
    key = jax.random.PRNGKey(0)

    # --- Test 1: small module-consistent shapes, f32, VMEM-resident weights ---
    dim_in, dim_out, n_layer, n_node, batch = 4, 2, 2, 32, 8
    key, kx, kp = jax.random.split(key, 3)
    x = jax.random.normal(kx, (batch, dim_in), jnp.float32)
    params = init_dnn_params(kp, dim_in, dim_out, n_layer, n_node)
    y = jax.block_until_ready(dnn_forward(params, x))
    y_ref = dnn_forward_ref(params, x)
    assert y.shape == (batch, dim_out)
    assert jnp.allclose(y, y_ref, atol=1e-5, rtol=1e-5), "resident/f32 mismatch"

    # --- Test 2: exercise the HBM weight-streaming path + bf16 matmul operands ---
    dim_in, dim_out, n_layer, n_node, batch = 4, 3, 3, 256, 24
    key, kx, kp = jax.random.split(key, 3)
    x = jax.random.normal(kx, (batch, dim_in), jnp.float32)
    params = init_dnn_params(kp, dim_in, dim_out, n_layer, n_node)
    y = jax.block_until_ready(
        dnn_forward(params, x, compute_dtype=jnp.bfloat16,
                    resident_weight_budget_bytes=1))   # force streaming for the test
    y_ref = dnn_forward_ref(params, x)
    assert y.shape == (batch, dim_out)
    assert jnp.allclose(y, y_ref, atol=3e-2, rtol=3e-2), "streamed/bf16 mismatch"

    print("KERNEL_OK")
</pallas_src>

<mosaic_0001>
module attributes {stable_mosaic.version = 11 : i64} {
  func.func @_resident_mlp_kernel(%arg0: i32, %arg1: memref<8x128xf32, #tpu.memory_space<vmem>>, %arg2: memref<128x128xf32, #tpu.memory_space<vmem>>, %arg3: memref<1x128xf32, #tpu.memory_space<vmem>>, %arg4: memref<128x128xf32, #tpu.memory_space<vmem>>, %arg5: memref<1x128xf32, #tpu.memory_space<vmem>>, %arg6: memref<128x128xf32, #tpu.memory_space<vmem>>, %arg7: memref<1x128xf32, #tpu.memory_space<vmem>>, %arg8: memref<128x128xf32, #tpu.memory_space<vmem>>, %arg9: memref<1x128xf32, #tpu.memory_space<vmem>>, %arg10: memref<8x128xf32, #tpu.memory_space<vmem>>, %arg11: memref<8x128xf32, #tpu.memory_space<vmem>>, %arg12: memref<8x128xf32, #tpu.memory_space<vmem>>) attributes {dimension_semantics = [#tpu.dimension_semantics<parallel>], iteration_bounds = array<i64: 1>, scalar_prefetch = 0 : i64, scratch_operands = 2 : i64, tpu.core_type = #tpu.core_type<tc>, window_params = [{transform_indices = @transform_0, window_bounds = array<i64: 8, 128>}, {pipeline_mode = #tpu.pipeline_mode<synchronous>, transform_indices = @transform_1, window_bounds = array<i64: 128, 128>}, {pipeline_mode = #tpu.pipeline_mode<synchronous>, transform_indices = @transform_2, window_bounds = array<i64: 1, 128>}, {pipeline_mode = #tpu.pipeline_mode<synchronous>, transform_indices = @transform_3, window_bounds = array<i64: 128, 128>}, {pipeline_mode = #tpu.pipeline_mode<synchronous>, transform_indices = @transform_4, window_bounds = array<i64: 1, 128>}, {pipeline_mode = #tpu.pipeline_mode<synchronous>, transform_indices = @transform_5, window_bounds = array<i64: 128, 128>}, {pipeline_mode = #tpu.pipeline_mode<synchronous>, transform_indices = @transform_6, window_bounds = array<i64: 1, 128>}, {pipeline_mode = #tpu.pipeline_mode<synchronous>, transform_indices = @transform_7, window_bounds = array<i64: 128, 128>}, {pipeline_mode = #tpu.pipeline_mode<synchronous>, transform_indices = @transform_8, window_bounds = array<i64: 1, 128>}, {transform_indices = @transform_9, window_bounds = array<i64: 8, 128>}]} {
    %c0 = arith.constant 0 : index
    %c0_0 = arith.constant 0 : index
    %0 = vector.load %arg1[%c0, %c0_0] : memref<8x128xf32, #tpu.memory_space<vmem>>, vector<8x128xf32>
    %c0_1 = arith.constant 0 : index
    %c0_2 = arith.constant 0 : index
    %1 = vector.load %arg2[%c0_1, %c0_2] : memref<128x128xf32, #tpu.memory_space<vmem>>, vector<128x128xf32>
    %cst = arith.constant dense<0.000000e+00> : vector<8x128xf32>
    %2 = tpu.matmul %0, %1, %cst {dimension_numbers = #tpu.dot_dimension_numbers<[1], [0], [0], [1], [0, 0, 1, 1], [], []>} : vector<8x128xf32>, vector<128x128xf32>, vector<8x128xf32> -> vector<8x128xf32>
    %c0_3 = arith.constant 0 : index
    %c0_4 = arith.constant 0 : index
    %3 = vector.load %arg3[%c0_3, %c0_4] : memref<1x128xf32, #tpu.memory_space<vmem>>, vector<1x128xf32>
    %4 = vector.broadcast %3 : vector<1x128xf32> to vector<8x128xf32>
    %5 = arith.addf %2, %4 : vector<8x128xf32>
    %6 = math.tanh %5 : vector<8x128xf32>
    %c0_5 = arith.constant 0 : index
    %c0_6 = arith.constant 0 : index
    %7 = vector.load %arg11[%c0_5, %c0_6] : memref<8x128xf32, #tpu.memory_space<vmem>>, vector<8x128xf32>
    tpu.vector_store %arg11[%c0_5, %c0_6], %6 {strides = array<i32>} : memref<8x128xf32, #tpu.memory_space<vmem>>, vector<8x128xf32>,
    %c0_7 = arith.constant 0 : index
    %c0_8 = arith.constant 0 : index
    %8 = vector.load %arg11[%c0_7, %c0_8] : memref<8x128xf32, #tpu.memory_space<vmem>>, vector<8x128xf32>
    %c0_9 = arith.constant 0 : index
    %c0_10 = arith.constant 0 : index
    %9 = vector.load %arg4[%c0_9, %c0_10] : memref<128x128xf32, #tpu.memory_space<vmem>>, vector<128x128xf32>
    %cst_11 = arith.constant dense<0.000000e+00> : vector<8x128xf32>
    %10 = tpu.matmul %8, %9, %cst_11 {dimension_numbers = #tpu.dot_dimension_numbers<[1], [0], [0], [1], [0, 0, 1, 1], [], []>} : vector<8x128xf32>, vector<128x128xf32>, vector<8x128xf32> -> vector<8x128xf32>
    %c0_12 = arith.constant 0 : index
    %c0_13 = arith.constant 0 : index
    %11 = vector.load %arg5[%c0_12, %c0_13] : memref<1x128xf32, #tpu.memory_space<vmem>>, vector<1x128xf32>
    %12 = vector.broadcast %11 : vector<1x128xf32> to vector<8x128xf32>
    %13 = arith.addf %10, %12 : vector<8x128xf32>
    %14 = math.tanh %13 : vector<8x128xf32>
    %c0_14 = arith.constant 0 : index
    %c0_15 = arith.constant 0 : index
    %15 = vector.load %arg12[%c0_14, %c0_15] : memref<8x128xf32, #tpu.memory_space<vmem>>, vector<8x128xf32>
    tpu.vector_store %arg12[%c0_14, %c0_15], %14 {strides = array<i32>} : memref<8x128xf32, #tpu.memory_space<vmem>>, vector<8x128xf32>,
    %c0_16 = arith.constant 0 : index
    %c0_17 = arith.constant 0 : index
    %16 = vector.load %arg12[%c0_16, %c0_17] : memref<8x128xf32, #tpu.memory_space<vmem>>, vector<8x128xf32>
    %c0_18 = arith.constant 0 : index
    %c0_19 = arith.constant 0 : index
    %17 = vector.load %arg6[%c0_18, %c0_19] : memref<128x128xf32, #tpu.memory_space<vmem>>, vector<128x128xf32>
    %cst_20 = arith.constant dense<0.000000e+00> : vector<8x128xf32>
    %18 = tpu.matmul %16, %17, %cst_20 {dimension_numbers = #tpu.dot_dimension_numbers<[1], [0], [0], [1], [0, 0, 1, 1], [], []>} : vector<8x128xf32>, vector<128x128xf32>, vector<8x128xf32> -> vector<8x128xf32>
    %c0_21 = arith.constant 0 : index
    %c0_22 = arith.constant 0 : index
    %19 = vector.load %arg7[%c0_21, %c0_22] : memref<1x128xf32, #tpu.memory_space<vmem>>, vector<1x128xf32>
    %20 = vector.broadcast %19 : vector<1x128xf32> to vector<8x128xf32>
    %21 = arith.addf %18, %20 : vector<8x128xf32>
    %22 = math.tanh %21 : vector<8x128xf32>
    %c0_23 = arith.constant 0 : index
    %c0_24 = arith.constant 0 : index
    %23 = vector.load %arg11[%c0_23, %c0_24] : memref<8x128xf32, #tpu.memory_space<vmem>>, vector<8x128xf32>
    tpu.vector_store %arg11[%c0_23, %c0_24], %22 {strides = array<i32>} : memref<8x128xf32, #tpu.memory_space<vmem>>, vector<8x128xf32>,
    %c0_25 = arith.constant 0 : index
    %c0_26 = arith.constant 0 : index
    %24 = vector.load %arg11[%c0_25, %c0_26] : memref<8x128xf32, #tpu.memory_space<vmem>>, vector<8x128xf32>
    %c0_27 = arith.constant 0 : index
    %c0_28 = arith.constant 0 : index
    %25 = vector.load %arg8[%c0_27, %c0_28] : memref<128x128xf32, #tpu.memory_space<vmem>>, vector<128x128xf32>
    %cst_29 = arith.constant dense<0.000000e+00> : vector<8x128xf32>
    %26 = tpu.matmul %24, %25, %cst_29 {dimension_numbers = #tpu.dot_dimension_numbers<[1], [0], [0], [1], [0, 0, 1, 1], [], []>} : vector<8x128xf32>, vector<128x128xf32>, vector<8x128xf32> -> vector<8x128xf32>
    %c0_30 = arith.constant 0 : index
    %c0_31 = arith.constant 0 : index
    %27 = vector.load %arg9[%c0_30, %c0_31] : memref<1x128xf32, #tpu.memory_space<vmem>>, vector<1x128xf32>
    %28 = vector.broadcast %27 : vector<1x128xf32> to vector<8x128xf32>
    %29 = arith.addf %26, %28 : vector<8x128xf32>
    %c0_32 = arith.constant 0 : index
    %c0_33 = arith.constant 0 : index
    %30 = vector.load %arg10[%c0_32, %c0_33] : memref<8x128xf32, #tpu.memory_space<vmem>>, vector<8x128xf32>
    tpu.vector_store %arg10[%c0_32, %c0_33], %29 {strides = array<i32>} : memref<8x128xf32, #tpu.memory_space<vmem>>, vector<8x128xf32>,
    return
  }
  func.func @transform_0(%arg0: i32) -> (i32, i32) {
    %c0_i32 = arith.constant 0 : i32
    %c0_i32_0 = arith.constant 0 : i32
    return %arg0, %c0_i32 : i32, i32
  }
  func.func @transform_1(%arg0: i32) -> (i32, i32) {
    %c0_i32 = arith.constant 0 : i32
    %c0_i32_0 = arith.constant 0 : i32
    %c0_i32_1 = arith.constant 0 : i32
    return %c0_i32, %c0_i32_0 : i32, i32
  }
  func.func @transform_2(%arg0: i32) -> (i32, i32) {
    %c0_i32 = arith.constant 0 : i32
    %c0_i32_0 = arith.constant 0 : i32
    %c0_i32_1 = arith.constant 0 : i32
    return %c0_i32, %c0_i32_0 : i32, i32
  }
  func.func @transform_3(%arg0: i32) -> (i32, i32) {
    %c0_i32 = arith.constant 0 : i32
    %c0_i32_0 = arith.constant 0 : i32
    %c0_i32_1 = arith.constant 0 : i32
    return %c0_i32, %c0_i32_0 : i32, i32
  }
  func.func @transform_4(%arg0: i32) -> (i32, i32) {
    %c0_i32 = arith.constant 0 : i32
    %c0_i32_0 = arith.constant 0 : i32
    %c0_i32_1 = arith.constant 0 : i32
    return %c0_i32, %c0_i32_0 : i32, i32
  }
  func.func @transform_5(%arg0: i32) -> (i32, i32) {
    %c0_i32 = arith.constant 0 : i32
    %c0_i32_0 = arith.constant 0 : i32
    %c0_i32_1 = arith.constant 0 : i32
    return %c0_i32, %c0_i32_0 : i32, i32
  }
  func.func @transform_6(%arg0: i32) -> (i32, i32) {
    %c0_i32 = arith.constant 0 : i32
    %c0_i32_0 = arith.constant 0 : i32
    %c0_i32_1 = arith.constant 0 : i32
    return %c0_i32, %c0_i32_0 : i32, i32
  }
  func.func @transform_7(%arg0: i32) -> (i32, i32) {
    %c0_i32 = arith.constant 0 : i32
    %c0_i32_0 = arith.constant 0 : i32
    %c0_i32_1 = arith.constant 0 : i32
    return %c0_i32, %c0_i32_0 : i32, i32
  }
  func.func @transform_8(%arg0: i32) -> (i32, i32) {
    %c0_i32 = arith.constant 0 : i32
    %c0_i32_0 = arith.constant 0 : i32
    %c0_i32_1 = arith.constant 0 : i32
    return %c0_i32, %c0_i32_0 : i32, i32
  }
  func.func @transform_9(%arg0: i32) -> (i32, i32) {
    %c0_i32 = arith.constant 0 : i32
    %c0_i32_0 = arith.constant 0 : i32
    return %arg0, %c0_i32 : i32, i32
  }
}

</mosaic_0001>

<bundles_post_ra>
// kernel: tpu_custom_call.1
= control target key start
LH: loop header
LB: loop body
LE: loop exit
PB: predicated region body
PF: predicated region fallthrough
CT: control target
= control target key end

     0   :  { %14 = vsyncpa [#allocation5], 0  ;;  %s1161_s0 = inlined_call_operand.hbm [shape: f32[8,128], index: 0, kind: input, shape index: {}]   ;;  %s1162_s1 = inlined_call_operand.hbm [shape: f32[128,128], index: 1, kind: input, shape index: {}]   ;;  %s1163_s2 = inlined_call_operand.vmem [shape: f32[1,128], index: 2, kind: input, shape index: {}]   ;;  %s1164_s3 = inlined_call_operand.hbm [shape: f32[128,128], index: 3, kind: input, shape index: {}]   ;;  %s1165_s4 = inlined_call_operand.vmem [shape: f32[1,128], index: 4, kind: input, shape index: {}]   ;;  %s1166_s5 = inlined_call_operand.hbm [shape: f32[128,128], index: 5, kind: input, shape index: {}]   ;;  %s1167_s6 = inlined_call_operand.vmem [shape: f32[1,128], index: 6, kind: input, shape index: {}]   ;;  %s1168_s7 = inlined_call_operand.hbm [shape: f32[128,128], index: 7, kind: input, shape index: {}]   ;;  %s1169_s8 = inlined_call_operand.vmem [shape: f32[1,128], index: 8, kind: input, shape index: {}]   ;;  %s1170_s9 = inlined_call_operand.hbm [shape: f32[8,128], index: 9, kind: output, shape index: {}]  }
   0x1   :  { %15 = vsyncpa [#allocation8], 0 }
   0x2   :  { %16 = vsyncpa [#allocation11], 0 }
   0x3   :  { %17 = vsyncpa [#allocation6], 0  ;;  %s964_s30 = smov [#allocation7]   ;;  %s824_s13 = scalar_lea.hbm %s1162_s1, 2048 }
   0x4   :  { %s33_s10 = sshll.u32 %s964_s30, 4  ;;  %p825_p0 = scmp.ne.s32.totalorder %s1162_s1, %s824_s13  ;;  %s34_s10 = int_to_ptr.vmem [resolvable:$true] %s33_s10 }
   0x5   :  { %p828_p1 = scmp.lt.u32.totalorder %s824_s13, %s1162_s1 }
   0x7   :  { %p830_p2 = pnand %p828_p1, %p825_p0 }
   0x9   :  { %833 = shalt.err (!%p830_p2)
}
   0xa   :  { %s834_s18 = scalar_lea.vmem %s34_s10, 2048  ;;  %p839_p4 = scmp.lt.s32.totalorder %s34_s10, %s34_s10 }
   0xb   :  { %p835_p3 = scmp.ne.s32.totalorder %s34_s10, %s834_s18  ;;  %p840_p5 = scmp.lt.s32.totalorder %s834_s18, %s834_s18 }
   0xd   :  { %p841_p6 = por %p840_p5, %p839_p4 }
   0xf   :  { %p842_p7 = pnand %p841_p6, %p835_p3 }
  0x11   :  { %845 = shalt.err (!%p842_p7)
}
  0x12   :  { %s965_s19 = smov 128   ;;  %s966_s20 = smov 8  }
  0x13   :  { %39 = dma.hbm_to_vmem [thread:$0]  %s1162_s1, 2048, %s34_s10, [#allocation8], %s965_s19, %s965_s19, %s966_s20  }
  0x14   :  { %s967_s23 = smov [#allocation10]   ;;  %s968_s25 = smov [#allocation4]  }
  0x15   :  { %s61_s24 = sshll.u32 %s967_s23, 4  ;;  %s24_s26 = sshll.u32 %s968_s25, 4  ;;  %s62_s24 = int_to_ptr.vmem [resolvable:$true] %s61_s24  ;;  %s25_s26 = int_to_ptr.vmem [resolvable:$true] %s24_s26 }
  0x16   :  { %s846_s29 = scalar_lea.hbm %s1166_s5, 2048 }
  0x17   :  { %p847_p8 = scmp.ne.s32.totalorder %s1166_s5, %s846_s29  ;;  %p850_p9 = scmp.lt.u32.totalorder %s846_s29, %s1166_s5 }
  0x19   :  { %p852_p10 = pnand %p850_p9, %p847_p8 }
  0x1b   :  { %855 = shalt.err (!%p852_p10)
}
  0x1c   :  { %s856_s1 = scalar_lea.vmem %s62_s24, 2048  ;;  %p861_p12 = scmp.lt.s32.totalorder %s62_s24, %s62_s24 }
  0x1d   :  { %p857_p11 = scmp.ne.s32.totalorder %s62_s24, %s856_s1  ;;  %p862_p13 = scmp.lt.s32.totalorder %s856_s1, %s856_s1 }
  0x1f   :  { %p863_p0 = por %p862_p13, %p861_p12 }
  0x21   :  { %p864_p1 = pnand %p863_p0, %p857_p11 }
  0x23   :  { %867 = shalt.err (!%p864_p1)
}
  0x24   :  { %67 = dma.hbm_to_vmem [thread:$0]  %s1166_s5, 2048, %s62_s24, [#allocation11], %s965_s19, %s965_s19, %s966_s20  }
  0x25   :  { %s868_s17 = scalar_lea.hbm %s1161_s0, 128 }
  0x26   :  { %p869_p2 = scmp.ne.s32.totalorder %s1161_s0, %s868_s17  ;;  %p872_p3 = scmp.lt.u32.totalorder %s868_s17, %s1161_s0 }
  0x28   :  { %p874_p4 = pnand %p872_p3, %p869_p2 }
  0x2a   :  { %877 = shalt.err (!%p874_p4)
}
  0x2b   :  { %s878_s25 = scalar_lea.vmem %s25_s26, 128  ;;  %p883_p6 = scmp.lt.s32.totalorder %s25_s26, %s25_s26 }
  0x2c   :  { %p879_p5 = scmp.ne.s32.totalorder %s25_s26, %s878_s25  ;;  %p884_p7 = scmp.lt.s32.totalorder %s878_s25, %s878_s25 }
  0x2e   :  { %p885_p8 = por %p884_p7, %p883_p6 }
  0x30   :  { %p886_p9 = pnand %p885_p8, %p879_p5 }
  0x32   :  { %889 = shalt.err (!%p886_p9)
}
  0x33   :  { %27 = dma.hbm_to_vmem [thread:$0]  %s1161_s0, 128, %s25_s26, [#allocation5]  }
  0x34   :  { %s969_s27 = smov [#allocation9]   ;;  %s970_s29 = smov [#allocation12]  }
  0x35   :  { %s47_s28 = sshll.u32 %s969_s27, 4  ;;  %s75_s30 = sshll.u32 %s970_s29, 4  ;;  %s48_s28 = int_to_ptr.vmem [resolvable:$true] %s47_s28  ;;  %s76_s30 = int_to_ptr.vmem [resolvable:$true] %s75_s30 }
  0x36   :  { %s890_s13 = scalar_lea.hbm %s1164_s3, 2048 }
  0x37   :  { %p891_p10 = scmp.ne.s32.totalorder %s1164_s3, %s890_s13  ;;  %p894_p11 = scmp.lt.u32.totalorder %s890_s13, %s1164_s3 }
  0x39   :  { %p896_p12 = pnand %p894_p11, %p891_p10 }
  0x3b   :  { %899 = shalt.err (!%p896_p12)
}
  0x3c   :  { %s900_s0 = scalar_lea.vmem %s48_s28, 2048  ;;  %p905_p0 = scmp.lt.s32.totalorder %s48_s28, %s48_s28 }
  0x3d   :  { %p901_p13 = scmp.ne.s32.totalorder %s48_s28, %s900_s0  ;;  %p906_p1 = scmp.lt.s32.totalorder %s900_s0, %s900_s0 }
  0x3f   :  { %p907_p2 = por %p906_p1, %p905_p0 }
  0x41   :  { %p908_p3 = pnand %p907_p2, %p901_p13 }
  0x43   :  { %911 = shalt.err (!%p908_p3)
}
  0x44   :  { %53 = dma.hbm_to_vmem [thread:$0]  %s1164_s3, 2048, %s48_s28, [#allocation8], %s965_s19, %s965_s19, %s966_s20  }
  0x45   :  { %s912_s21 = scalar_lea.hbm %s1168_s7, 2048 }
  0x46   :  { %p913_p4 = scmp.ne.s32.totalorder %s1168_s7, %s912_s21  ;;  %p916_p5 = scmp.lt.u32.totalorder %s912_s21, %s1168_s7 }
  0x48   :  { %p918_p6 = pnand %p916_p5, %p913_p4 }
  0x4a   :  { %921 = shalt.err (!%p918_p6)
}
  0x4b   :  { %s922_s24 = scalar_lea.vmem %s76_s30, 2048  ;;  %p927_p8 = scmp.lt.s32.totalorder %s76_s30, %s76_s30 }
  0x4c   :  { %p923_p7 = scmp.ne.s32.totalorder %s76_s30, %s922_s24  ;;  %p928_p9 = scmp.lt.s32.totalorder %s922_s24, %s922_s24 }
  0x4e   :  { %p929_p10 = por %p928_p9, %p927_p8 }
  0x50   :  { %p930_p11 = pnand %p929_p10, %p923_p7 }
  0x52   :  { %933 = shalt.err (!%p930_p11)
}
  0x53   :  { %81 = dma.hbm_to_vmem [thread:$0]  %s1168_s7, 2048, %s76_s30, [#allocation11], %s965_s19, %s965_s19, %s966_s20  }
  0x54   :  { %956 = dma.done.wait [#allocation5], 128  }
  0x55   :  { %957 = vsyncadd [#allocation5], 4294967168 }
  0x56   :  { %958 = dma.done.wait [#allocation8], 4096  }
  0x57   :  { %959 = vsyncadd [#allocation8], 4294963200 }
  0x58   :  { %960 = dma.done.wait [#allocation11], 4096  }
  0x59   :  { %961 = vsyncadd [#allocation11], 4294963200  ;;  %v971_v0 = vmov 0.0|0.0   ;;  %vm972_vm0 = vmmov 0   ;;  %v973_v1 = vmov 0.0   ;;  %v100_v2 = vld [vmem:[#allocation7] sm:$0xff] }
  0x5a   :  { %711 = vmatprep.subr.bf16.mxu0 %v971_v0  ;;  %603 = vmatprep.mubr.msk.f32.mxu0 %vm972_vm0, %v973_v1  ;;  %v101_v3 = vld [vmem:[#allocation7 + $0x8] sm:$0xff]  ;;  %v102_v4 = vld [vmem:[#allocation7 + $0x10] sm:$0xff]  ;;  %v103_v6 = vld [vmem:[#allocation7 + $0x18] sm:$0xff]  ;;  %s974_s11 = smov [#allocation13]  }
  0x5b   :  { %735 = vmatprep.subr.bf16.mxu1 %v971_v0  ;;  %638 = vmatprep.mubr.msk.f32.mxu1 %vm972_vm0, %v973_v1  ;;  %v712_v5 = vpack.c.bf16 %v101_v3, %v100_v2  ;;  %v715_v7 = vpack.c.bf16 %v103_v6, %v102_v4  ;;  %v104_v8 = vld [vmem:[#allocation7 + $0x20] sm:$0xff]  ;;  %v105_v9 = vld [vmem:[#allocation7 + $0x28] sm:$0xff]  ;;  %v198_v12 = vld [vmem:[#allocation9 + $0x10] sm:$0xff]  ;;  %s488_s12 = sshll.u32 %s974_s11, 4  ;;  %s489_s12 = int_to_ptr.vmem [resolvable:$true] %s488_s12 }
  0x5c   :  { %v196_v10 = vld [vmem:[#allocation9] sm:$0xff]  ;;  %v197_v11 = vld [vmem:[#allocation9 + $0x8] sm:$0xff]  ;;  %v199_v13 = vld [vmem:[#allocation9 + $0x18] sm:$0xff]  ;;  %v718_v14 = vpack.c.bf16 %v105_v9, %v104_v8  ;;  %s934_s13 = scalar_lea.vmem %s489_s12, 128  ;;  %p939_p13 = scmp.lt.s32.totalorder %s489_s12, %s489_s12 }
  0x5d   :  { %713 = vmatpush3.bf16.msra.mxu0 %v712_v5  ;;  %v736_v15 = vpack.c.bf16 %v197_v11, %v196_v10  ;;  %v106_v16 = vld [vmem:[#allocation7 + $0x30] sm:$0xff]  ;;  %v107_v17 = vld [vmem:[#allocation7 + $0x38] sm:$0xff]  ;;  %v739_v18 = vpack.c.bf16 %v199_v13, %v198_v12  ;;  %v200_v19 = vld [vmem:[#allocation9 + $0x20] sm:$0xff]  ;;  %p935_p12 = scmp.ne.s32.totalorder %s489_s12, %s934_s13  ;;  %p940_p0 = scmp.lt.s32.totalorder %s934_s13, %s934_s13 }
  0x5e   :  { %714 = vmatprep.subr.bf16.mxu0 %v971_v0  ;;  %v201_v20 = vld [vmem:[#allocation9 + $0x28] sm:$0xff]  ;;  %v721_v21 = vpack.c.bf16 %v107_v17, %v106_v16  ;;  %v108_v22 = vld [vmem:[#allocation7 + $0x40] sm:$0xff]  ;;  %v202_v25 = vld [vmem:[#allocation9 + $0x30] sm:$0xff] }
  0x5f   :  { %737 = vmatpush3.bf16.msra.mxu1 %v736_v15  ;;  %v109_v23 = vld [vmem:[#allocation7 + $0x48] sm:$0xff]  ;;  %v742_v24 = vpack.c.bf16 %v201_v20, %v200_v19  ;;  %v203_v26 = vld [vmem:[#allocation9 + $0x38] sm:$0xff]  ;;  %v110_v28 = vld [vmem:[#allocation7 + $0x50] sm:$0xff]  ;;  %p941_p1 = por %p940_p0, %p939_p13 }
  0x60   :  { %738 = vmatprep.subr.bf16.mxu1 %v971_v0  ;;  %v724_v27 = vpack.c.bf16 %v109_v23, %v108_v22  ;;  %v111_v29 = vld [vmem:[#allocation7 + $0x58] sm:$0xff]  ;;  %v745_v30 = vpack.c.bf16 %v203_v26, %v202_v25  ;;  %v204_v31 = vld [vmem:[#allocation9 + $0x40] sm:$0xff]  ;;  %v205_v32 = vld [vmem:[#allocation9 + $0x48] sm:$0xff] }
  0x61   :  { %716 = vmatpush3.bf16.msra.mxu0 %v715_v7  ;;  %v727_v33 = vpack.c.bf16 %v111_v29, %v110_v28  ;;  %v112_v34 = vld [vmem:[#allocation7 + $0x60] sm:$0xff]  ;;  %v113_v35 = vld [vmem:[#allocation7 + $0x68] sm:$0xff]  ;;  %v748_v36 = vpack.c.bf16 %v205_v32, %v204_v31  ;;  %v114_v38 = vld [vmem:[#allocation7 + $0x70] sm:$0xff]  ;;  %p942_p2 = pnand %p941_p1, %p935_p12 }
  0x62   :  { %717 = vmatprep.subr.bf16.mxu0 %v971_v0  ;;  %v730_v37 = vpack.c.bf16 %v113_v35, %v112_v34  ;;  %v115_v39 = vld [vmem:[#allocation7 + $0x78] sm:$0xff]  ;;  %v206_v42 = vld [vmem:[#allocation9 + $0x50] sm:$0xff]  ;;  %v208_v45 = vld [vmem:[#allocation9 + $0x60] sm:$0xff] }
  0x63   :  { %740 = vmatpush3.bf16.msra.mxu1 %v739_v18  ;;  %v733_v40 = vpack.c.bf16 %v115_v39, %v114_v38  ;;  %v99_v41 = vld [vmem:[#allocation4] sm:$0xff]  ;;  %v209_v46 = vld [vmem:[#allocation9 + $0x68] sm:$0xff]  ;;  %v210_v48 = vld [vmem:[#allocation9 + $0x70] sm:$0xff] }
  0x64   :  { %741 = vmatprep.subr.bf16.mxu1 %v971_v0  ;;  %v207_v43 = vld [vmem:[#allocation9 + $0x58] sm:$0xff]  ;;  %v754_v47 = vpack.c.bf16 %v209_v46, %v208_v45  ;;  %v292_v51 = vld [vmem:[#allocation10] sm:$0xff]  ;;  %v293_v52 = vld [vmem:[#allocation10 + $0x8] sm:$0xff] }
  0x65   :  { %719 = vmatpush3.bf16.msra.mxu0 %v718_v14  ;;  %v751_v44 = vpack.c.bf16 %v207_v43, %v206_v42  ;;  %v211_v49 = vld [vmem:[#allocation9 + $0x78] sm:$0xff]  ;;  %v294_v53 = vld [vmem:[#allocation10 + $0x10] sm:$0xff]  ;;  %v760_v54 = vpack.c.bf16 %v293_v52, %v292_v51  ;;  %v296_v57 = vld [vmem:[#allocation10 + $0x20] sm:$0xff] }
  0x66   :  { %720 = vmatprep.subr.bf16.mxu0 %v971_v0  ;;  %v757_v50 = vpack.c.bf16 %v211_v49, %v210_v48  ;;  %v295_v55 = vld [vmem:[#allocation10 + $0x18] sm:$0xff]  ;;  %v297_v58 = vld [vmem:[#allocation10 + $0x28] sm:$0xff]  ;;  %v298_v60 = vld [vmem:[#allocation10 + $0x30] sm:$0xff] }
  0x67   :  { %743 = vmatpush3.bf16.msra.mxu1 %v742_v24  ;;  %v763_v56 = vpack.c.bf16 %v295_v55, %v294_v53  ;;  %v766_v59 = vpack.c.bf16 %v297_v58, %v296_v57  ;;  %v299_v61 = vld [vmem:[#allocation10 + $0x38] sm:$0xff]  ;;  %v300_v63 = vld [vmem:[#allocation10 + $0x40] sm:$0xff]  ;;  %v301_v2 = vld [vmem:[#allocation10 + $0x48] sm:$0xff] }
  0x68   :  { %744 = vmatprep.subr.bf16.mxu1 %v971_v0  ;;  %v769_v62 = vpack.c.bf16 %v299_v61, %v298_v60  ;;  %v772_v3 = vpack.c.bf16 %v301_v2, %v300_v63  ;;  %v499_v4 = vld [vmem:[%s1163_s2] ss:$0 sm:$0xff]  ;;  %v302_v9 = vld [vmem:[#allocation10 + $0x50] sm:$0xff]  ;;  %v304_v12 = vld [vmem:[#allocation10 + $0x60] sm:$0xff] }
  0x69   :  { %722 = vmatpush3.bf16.msra.mxu0 %v721_v21  ;;  %v303_v10 = vld [vmem:[#allocation10 + $0x58] sm:$0xff]  ;;  %v305_v13 = vld [vmem:[#allocation10 + $0x68] sm:$0xff]  ;;  %v306_v15 = vld [vmem:[#allocation10 + $0x70] sm:$0xff] }
  0x6a   :  { %723 = vmatprep.subr.bf16.mxu0 %v971_v0  ;;  %v775_v11 = vpack.c.bf16 %v303_v10, %v302_v9  ;;  %v778_v14 = vpack.c.bf16 %v305_v13, %v304_v12  ;;  %v307_v16 = vld [vmem:[#allocation10 + $0x78] sm:$0xff]  ;;  %v388_v18 = vld [vmem:[#allocation12] sm:$0xff]  ;;  %v389_v19 = vld [vmem:[#allocation12 + $0x8] sm:$0xff] }
  0x6b   :  { %746 = vmatpush3.bf16.msra.mxu1 %v745_v30  ;;  %v781_v17 = vpack.c.bf16 %v307_v16, %v306_v15  ;;  %v390_v20 = vld [vmem:[#allocation12 + $0x10] sm:$0xff]  ;;  %v391_v21 = vld [vmem:[#allocation12 + $0x18] sm:$0xff]  ;;  %v392_v23 = vld [vmem:[#allocation12 + $0x20] sm:$0xff] }
  0x6c   :  { %747 = vmatprep.subr.bf16.mxu1 %v971_v0  ;;  %v787_v22 = vpack.c.bf16 %v391_v21, %v390_v20  ;;  %v393_v24 = vld [vmem:[#allocation12 + $0x28] sm:$0xff]  ;;  %v394_v26 = vld [vmem:[#allocation12 + $0x30] sm:$0xff]  ;;  %v396_v29 = vld [vmem:[#allocation12 + $0x40] sm:$0xff] }
  0x6d   :  { %725 = vmatpush3.bf16.msra.mxu0 %v724_v27  ;;  %v790_v25 = vpack.c.bf16 %v393_v24, %v392_v23  ;;  %v395_v27 = vld [vmem:[#allocation12 + $0x38] sm:$0xff]  ;;  %v397_v30 = vld [vmem:[#allocation12 + $0x48] sm:$0xff]  ;;  %v402_v43 = vld [vmem:[#allocation12 + $0x70] sm:$0xff] }
  0x6e   :  { %726 = vmatprep.subr.bf16.mxu0 %v971_v0  ;;  %v793_v28 = vpack.c.bf16 %v395_v27, %v394_v26  ;;  %v796_v31 = vpack.c.bf16 %v397_v30, %v396_v29  ;;  %v500_v32 = vld [vmem:[%s1165_s4] ss:$0 sm:$0xff] }
  0x6f   :  { %749 = vmatpush3.bf16.msra.mxu1 %v748_v36  ;;  %v399_v38 = vld [vmem:[#allocation12 + $0x58] sm:$0xff] }
  0x70   :  { %750 = vmatprep.subr.bf16.mxu1 %v971_v0  ;;  %v501_v46 = vld [vmem:[%s1167_s6] ss:$0 sm:$0xff] }
  0x71   :  { %728 = vmatpush3.bf16.msra.mxu0 %v727_v33  ;;  %v502_v51 = vld [vmem:[%s1169_s8] ss:$0 sm:$0xff] }
  0x72   :  { %729 = vmatprep.subr.bf16.mxu0 %v971_v0 }
  0x73   :  { %752 = vmatpush3.bf16.msra.mxu1 %v751_v44  ;;  %v403_v44 = vld [vmem:[#allocation12 + $0x78] sm:$0xff] }
  0x74   :  { %753 = vmatprep.subr.bf16.mxu1 %v971_v0  ;;  %v805_v45 = vpack.c.bf16 %v403_v44, %v402_v43 }
  0x75   :  { %731 = vmatpush3.bf16.msra.mxu0 %v730_v37  ;;  %v398_v37 = vld [vmem:[#allocation12 + $0x50] sm:$0xff] }
  0x76   :  { %732 = vmatprep.subr.bf16.mxu0 %v971_v0  ;;  %v799_v39 = vpack.c.bf16 %v399_v38, %v398_v37 }
  0x77   :  { %755 = vmatpush3.bf16.msra.mxu1 %v754_v47 }
  0x78   :  { %756 = vmatprep.subr.bf16.mxu1 %v971_v0 }
  0x79   :  { %734 = vmatpush3.bf16.msra.mxu0 %v733_v40  ;;  %v400_v40 = vld [vmem:[#allocation12 + $0x60] sm:$0xff] }
  0x7a   :  { %759 = vmatprep.subr.bf16.mxu0 %v971_v0 }
  0x7b   :  { %758 = vmatpush3.bf16.msra.mxu1 %v757_v50 }
  0x7c   :  { %604 = vmatmul.mubr.f32.vlgmr.msra.gmra.mrb[0].mxu0 %v99_v41  ;;  %783 = vmatprep.subr.bf16.mxu1 %v971_v0  ;;  %v401_v41 = vld [vmem:[#allocation12 + $0x68] sm:$0xff] }
  0x7d   :  { %673 = vmatprep.mubr.msk.f32.mxu0 %vm972_vm0, %v973_v1  ;;  %761 = vmatpush3.bf16.msra.mxu0 %v760_v54  ;;  %v802_v42 = vpack.c.bf16 %v401_v41, %v400_v40 }
  0x7e   :  { %762 = vmatprep.subr.bf16.mxu0 %v971_v0 }
  0x81   :  { %764 = vmatpush3.bf16.msra.mxu0 %v763_v56 }
  0x82   :  { %765 = vmatprep.subr.bf16.mxu0 %v971_v0 }
  0x85   :  { %767 = vmatpush3.bf16.msra.mxu0 %v766_v59 }
  0x86   :  { %768 = vmatprep.subr.bf16.mxu0 %v971_v0 }
  0x89   :  { %770 = vmatpush3.bf16.msra.mxu0 %v769_v62 }
  0x8a   :  { %771 = vmatprep.subr.bf16.mxu0 %v971_v0 }
  0x8d   :  { %773 = vmatpush3.bf16.msra.mxu0 %v772_v3 }
  0x8e   :  { %774 = vmatprep.subr.bf16.mxu0 %v971_v0 }
  0x91   :  { %776 = vmatpush3.bf16.msra.mxu0 %v775_v11 }
  0x92   :  { %777 = vmatprep.subr.bf16.mxu0 %v971_v0 }
  0x95   :  { %779 = vmatpush3.bf16.msra.mxu0 %v778_v14 }
  0x96   :  { %780 = vmatprep.subr.bf16.mxu0 %v971_v0 }
  0x99   :  { %782 = vmatpush3.bf16.msra.mxu0 %v781_v17 }
 0x14f   :  { %v189_v5 = vpop.f32.mrb[0].mxu0 }
 0x150   :  { %v190_v6 = vadd.f32 %v499_v4, %v189_v5  ;;  %v605_v7 = vpop.f32.mrb[1].mxu0 }
 0x152   :  { %818 = vtanh.f32 %v190_v6 }
 0x15c   :  { %v819_v8 = vpop.eup %818 }
 0x15d   :  { %639 = vmatmul.mubr.f32.vlgmr.msra.gmra.mrb[0].mxu1 %v819_v8 }
 0x15e   :  { %708 = vmatprep.mubr.msk.f32.mxu1 %vm972_vm0, %v973_v1  ;;  %v784_v1 = vpack.c.bf16 %v389_v19, %v388_v18 }
 0x160   :  { %785 = vmatpush3.bf16.msra.mxu1 %v784_v1 }
 0x161   :  { %786 = vmatprep.subr.bf16.mxu1 %v971_v0 }
 0x164   :  { %788 = vmatpush3.bf16.msra.mxu1 %v787_v22 }
 0x165   :  { %789 = vmatprep.subr.bf16.mxu1 %v971_v0 }
 0x168   :  { %791 = vmatpush3.bf16.msra.mxu1 %v790_v25 }
 0x169   :  { %792 = vmatprep.subr.bf16.mxu1 %v971_v0 }
 0x16c   :  { %794 = vmatpush3.bf16.msra.mxu1 %v793_v28 }
 0x16d   :  { %795 = vmatprep.subr.bf16.mxu1 %v971_v0 }
 0x170   :  { %797 = vmatpush3.bf16.msra.mxu1 %v796_v31 }
 0x171   :  { %798 = vmatprep.subr.bf16.mxu1 %v971_v0 }
 0x174   :  { %800 = vmatpush3.bf16.msra.mxu1 %v799_v39 }
 0x175   :  { %801 = vmatprep.subr.bf16.mxu1 %v971_v0 }
 0x178   :  { %803 = vmatpush3.bf16.msra.mxu1 %v802_v42 }
 0x179   :  { %804 = vmatprep.subr.bf16.mxu1 %v971_v0 }
 0x17c   :  { %806 = vmatpush3.bf16.msra.mxu1 %v805_v45 }
 0x230   :  { %v285_v33 = vpop.f32.mrb[0].mxu1 }
 0x231   :  { %v286_v34 = vadd.f32 %v500_v32, %v285_v33  ;;  %v640_v35 = vpop.f32.mrb[1].mxu1 }
 0x233   :  { %820 = vtanh.f32 %v286_v34 }
 0x23d   :  { %v821_v36 = vpop.eup %820 }
 0x23e   :  { %674 = vmatmul.mubr.f32.vlgmr.msra.gmra.mrb[2].mxu0 %v821_v36 }
 0x311   :  { %v381_v47 = vpop.f32.mrb[2].mxu0 }
 0x312   :  { %v382_v48 = vadd.f32 %v501_v46, %v381_v47  ;;  %v675_v49 = vpop.f32.mrb[3].mxu0 }
 0x314   :  { %822 = vtanh.f32 %v382_v48 }
 0x31e   :  { %v823_v50 = vpop.eup %822 }
 0x31f   :  { %709 = vmatmul.mubr.f32.vlgmr.msra.gmra.mrb[2].mxu1 %v823_v50 }
 0x3f2   :  { %v477_v52 = vpop.f32.mrb[2].mxu1 }
 0x3f3   :  { %v478_v53 = vadd.f32 %v502_v51, %v477_v52  ;;  %v710_v0 = vpop.f32.mrb[3].mxu1 }
 0x3f5   :  { %481 = vst [vmem:[#allocation13] sm:$0xff] %v478_v53 }
 0x3f6   :  { %945 = shalt.err (!%p942_p2)
}
 0x3f7   :  { %s946_s10 = scalar_lea.hbm %s1170_s9, 128 }
 0x3f8   :  { %p947_p3 = scmp.ne.s32.totalorder %s1170_s9, %s946_s10  ;;  %p950_p4 = scmp.lt.u32.totalorder %s946_s10, %s1170_s9 }
 0x3fa   :  { %p952_p5 = pnand %p950_p4, %p947_p3 }
 0x3fc   :  { %955 = shalt.err (!%p952_p5)
}
 0x3fd   :  { %491 = dma.vmem_to_hbm [thread:$0]  %s489_s12, 128, %s1170_s9, [#allocation6]  }
 0x3fe   :  { %962 = dma.done.wait [#allocation6], 128  }
 0x3ff   :  { %963 = vsyncadd [#allocation6], 4294967168 }
 0x400   :  { %495 = vsyncpa [#allocation5], 1 }
 0x401   :  { %496 = vsyncpa [#allocation8], 1 }
 0x402   :  { %497 = vsyncpa [#allocation11], 1 }
 0x403   :  { %498 = vsyncpa [#allocation6], 1 }

</bundles_post_ra>
